<compile_context>
chip_gen: v6e
topology: v6e:2x2x1
jax: 0.10.0
libtpu: 0.0.40
codegen_flags: <defaults>
</compile_context>

<pallas_src>
import math
import functools

import jax
import jax.numpy as jnp
import numpy as np
from jax.experimental import pallas as pl
from jax.experimental.pallas import tpu as pltpu


def _pma_kernel(num_heads, d_model,
                vp_ref, wkv_ref, bkv_ref, wot_ref, x_ref,
                xout_ref, aout_ref):
    """One grid step = Bt batch elements of the PMA forward pass."""
    f32 = jnp.float32
    H, D = num_heads, d_model
    Bt, N, _ = x_ref.shape

    # Packed per-feature parameters: rows are
    #   [0]         q_row        (full fc_q(S) output, used for the residual)
    #   [1   :1+H ] q_heads      (per-head masked q, pre-scaled by 1/sqrt(D))
    #   [1+H :1+2H] head_mask    (0/1 mask selecting each head's feature slice)
    #   [1+2H: +5 ] bo, g0, b0, g1, b1
    vp = vp_ref[...].astype(f32)
    q_row = vp[0:1, :]                       # (1, D)
    q_heads = vp[1:1 + H, :]                 # (H, D)
    h_mask = vp[1 + H:1 + 2 * H, :]          # (H, D)
    bo = vp[1 + 2 * H:2 + 2 * H, :]          # (1, D)
    g0 = vp[2 + 2 * H:3 + 2 * H, :]
    b0 = vp[3 + 2 * H:4 + 2 * H, :]
    g1 = vp[4 + 2 * H:5 + 2 * H, :]
    b1 = vp[5 + 2 * H:6 + 2 * H, :]

    # Fused K/V projection on the whole batch tile (single big MXU matmul).
    x_flat = x_ref[...].reshape(Bt * N, D)                                  # (Bt*N, D)
    kv = jnp.dot(x_flat, wkv_ref[...], preferred_element_type=f32)          # (Bt*N, 2D)
    kv = kv + bkv_ref[...].astype(f32)
    k3 = kv[:, :D].reshape(Bt, N, D)                                        # (Bt, N, D)
    v3 = kv[:, D:].reshape(Bt, N, D)                                        # (Bt, N, D)

    # Per-head scores via masked-q trick (zeros outside the head's slice make the
    # full-D contraction equal to the per-head ds-wide contraction).
    qb = jnp.broadcast_to(q_heads[None], (Bt, H, D))                        # (Bt, H, D)
    s = jnp.einsum('bhd,bnd->bhn', qb, k3, preferred_element_type=f32)      # (Bt, H, N)

    # softmax over the set dimension N (lane axis)
    m = jnp.max(s, axis=-1, keepdims=True)
    p = jnp.exp(s - m)
    a = p / jnp.sum(p, axis=-1, keepdims=True)                              # (Bt, H, N)

    # Attention output: full-D per head, then head-mask select/recombine.
    o_full = jnp.einsum('bhn,bnd->bhd', a, v3, preferred_element_type=f32)  # (Bt, H, D)
    o_attn = jnp.sum(o_full * h_mask[None], axis=1)                         # (Bt, D)

    # Residual with the (full, unmasked) projected query.
    o = q_row + o_attn                                                      # (Bt, D)

    # LayerNorm 0 (eps matches nn.LayerNorm default)
    mu = jnp.mean(o, axis=-1, keepdims=True)
    var = jnp.mean((o - mu) ** 2, axis=-1, keepdims=True)
    o = (o - mu) * jax.lax.rsqrt(var + 1e-5) * g0 + b0

    # O = O + relu(fc_o(O))
    fo = jnp.dot(o, wot_ref[...].astype(f32), preferred_element_type=f32) + bo
    o = o + jnp.maximum(fo, 0.0)

    # LayerNorm 1
    mu = jnp.mean(o, axis=-1, keepdims=True)
    var = jnp.mean((o - mu) ** 2, axis=-1, keepdims=True)
    o = (o - mu) * jax.lax.rsqrt(var + 1e-5) * g1 + b1

    # nan_to_num applied to x only (matches the PyTorch forward)
    o = jnp.nan_to_num(o)

    xout_ref[...] = o.astype(xout_ref.dtype)                                # (Bt, D)
    aout_ref[...] = a.astype(aout_ref.dtype)                                # (Bt, H, N)


def _choose_bt(B, N, D):
    """Pick a batch tile: fill the MXU (~512 projection rows) but stay small in VMEM."""
    target_rows = 512
    bytes_cap = 2 * 1024 * 1024                       # X-block budget per buffer
    bt = max(1, min(target_rows // max(N, 1), bytes_cap // max(1, N * D * 4)))
    if bt >= B:
        return B, B                                   # single tile: block == full dims
    bt = max(8, (bt // 8) * 8)                        # sublane-aligned when tiling
    b_pad = ((B + bt - 1) // bt) * bt
    return bt, b_pad


def pma_forward(X, params, *, num_heads, use_bf16=False):
    """X: (B, N, D) float32. Returns (x_out (B, D), A_out (B*H, N))."""
    B, N, D = X.shape
    H = num_heads
    assert D % H == 0
    S, Wq, bq, Wk, bk, Wv, bv, Wo, bo, g0, b0, g1, b1 = params

    # ---- hoisted, batch-invariant precompute (tiny, plain XLA) ----
    q_row = (S @ Wq.T + bq).astype(jnp.float32)                       # (1, D) = fc_q(S)
    ds = D // H
    head_ids = jnp.arange(D) // ds
    h_mask = (head_ids[None, :] == jnp.arange(H)[:, None]).astype(jnp.float32)  # (H, D)
    q_heads = h_mask * q_row * (1.0 / math.sqrt(D))                   # masked + scaled

    packed = jnp.concatenate(
        [q_row, q_heads, h_mask, bo, g0, b0, g1, b1], axis=0).astype(jnp.float32)  # (6+2H, D)
    P = 6 + 2 * H

    Wkv = jnp.concatenate([Wk.T, Wv.T], axis=1)                       # (D, 2D)
    bkv = jnp.concatenate([bk, bv], axis=1).astype(jnp.float32)       # (1, 2D)
    WoT = Wo.T.astype(jnp.float32)                                    # (D, D)

    X_in = X
    if use_bf16:  # narrow inputs for the dominant projection matmul (v6e/v7x)
        Wkv = Wkv.astype(jnp.bfloat16)
        X_in = X_in.astype(jnp.bfloat16)
    else:
        Wkv = Wkv.astype(jnp.float32)

    Bt, B_pad = _choose_bt(B, N, D)
    if B_pad != B:
        X_in = jnp.pad(X_in, ((0, B_pad - B), (0, 0), (0, 0)))

    kernel = functools.partial(_pma_kernel, H, D)

    x_out, a_out = pl.pallas_call(
        kernel,
        out_shape=(
            jax.ShapeDtypeStruct((B_pad, D), jnp.float32),
            jax.ShapeDtypeStruct((B_pad, H, N), jnp.float32),
        ),
        grid_spec=pltpu.PrefetchScalarGridSpec(
            num_scalar_prefetch=0,
            grid=(B_pad // Bt,),
            in_specs=[
                pl.BlockSpec((P, D), lambda b: (0, 0)),          # packed vector params
                pl.BlockSpec((D, 2 * D), lambda b: (0, 0)),      # Wkv (fused K|V weight)
                pl.BlockSpec((1, 2 * D), lambda b: (0, 0)),      # bkv
                pl.BlockSpec((D, D), lambda b: (0, 0)),          # Wo^T
                pl.BlockSpec((Bt, N, D), lambda b: (b, 0, 0)),   # X tile
            ],
            out_specs=[
                pl.BlockSpec((Bt, D), lambda b: (b, 0)),         # pooled output
                pl.BlockSpec((Bt, H, N), lambda b: (b, 0, 0)),   # attention weights
            ],
        ),
        compiler_params=pltpu.CompilerParams(
            dimension_semantics=("parallel",),
            vmem_limit_bytes=32 * 1024 * 1024,
        ),
    )(packed, Wkv, bkv, WoT, X_in)

    x_final = x_out[:B]
    # torch.cat(split(dim_split, 2), 0) ordering: row index = h*B + b.
    # This is a tiny O(B*H*N) relayout (<< the B*N*D input traffic).
    A_final = jnp.transpose(a_out[:B], (1, 0, 2)).reshape(H * B, N)
    return x_final, A_final


def make_params(key, D):
    """Deterministic parameter init mirroring the module's shapes."""
    def xavier(k, shape):
        fan_in, fan_out = shape[1], shape[0]
        limit = math.sqrt(6.0 / (fan_in + fan_out))
        return jax.random.uniform(k, shape, jnp.float32, -limit, limit)

    ks = jax.random.split(key, 6)
    S = xavier(ks[0], (1, D))            # seed (1, 1, d_model) -> kept as (1, D)
    Wq = xavier(ks[1], (D, D))
    Wk = xavier(ks[2], (D, D))
    Wv = xavier(ks[3], (D, D))
    Wo = xavier(ks[4], (D, D))
    bq = jax.random.normal(ks[5], (1, D), jnp.float32) * 0.01
    bk = jnp.zeros((1, D), jnp.float32)
    bv = jnp.full((1, D), 0.02, jnp.float32)
    bo = jnp.zeros((1, D), jnp.float32)
    g0 = jnp.ones((1, D), jnp.float32)
    b0 = jnp.zeros((1, D), jnp.float32)
    g1 = jnp.ones((1, D), jnp.float32)
    b1 = jnp.zeros((1, D), jnp.float32)
    return (S, Wq, bq, Wk, bk, Wv, bv, Wo, bo, g0, b0, g1, b1)


def pma_reference(X, params, *, num_heads):
    """Pure-JAX reference of the PyTorch forward, for verification."""
    S, Wq, bq, Wk, bk, Wv, bv, Wo, bo, g0, b0, g1, b1 = params
    B, N, D = X.shape
    H = num_heads
    ds = D // H

    Q = jnp.broadcast_to(S[None], (B, 1, D))
    Qp = Q @ Wq.T + bq
    Kp = X @ Wk.T + bk
    Vp = X @ Wv.T + bv

    def split_heads(t):  # (B, L, D) -> (H*B, L, ds), head-major stacking
        parts = [t[:, :, h * ds:(h + 1) * ds] for h in range(H)]
        return jnp.concatenate(parts, axis=0)

    Q_, K_, V_ = split_heads(Qp), split_heads(Kp), split_heads(Vp)
    A = jnp.einsum('bqd,bkd->bqk', Q_, K_) / math.sqrt(D)
    A = jax.nn.softmax(A, axis=-1)
    Oh = Q_ + jnp.einsum('bqk,bkd->bqd', A, V_)
    O = jnp.concatenate([Oh[h * B:(h + 1) * B] for h in range(H)], axis=2)  # (B, 1, D)

    def ln(x, g, b):
        mu = x.mean(-1, keepdims=True)
        var = ((x - mu) ** 2).mean(-1, keepdims=True)
        return (x - mu) / jnp.sqrt(var + 1e-5) * g + b

    O = ln(O, g0, b0)
    O = O + jax.nn.relu(O @ Wo.T + bo)
    O = ln(O, g1, b1)
    O = jnp.nan_to_num(O)
    return O[:, 0, :], A[:, 0, :]


if __name__ == "__main__":
    B, N, D, H = 2, 8, 32, 2   # batch, set size, d_model, heads

    key = jax.random.PRNGKey(0)
    kx, kp = jax.random.split(key)
    X = jax.random.normal(kx, (B, N, D), jnp.float32)
    params = make_params(kp, D)

    fwd = jax.jit(functools.partial(pma_forward, num_heads=H))
    x_out, A_out = fwd(X, params)
    jax.block_until_ready((x_out, A_out))

    x_ref, A_ref = pma_reference(X, params, num_heads=H)
    np.testing.assert_allclose(np.asarray(x_out), np.asarray(x_ref), atol=1e-4, rtol=1e-4)
    np.testing.assert_allclose(np.asarray(A_out), np.asarray(A_ref), atol=1e-5, rtol=1e-4)

    print("KERNEL_OK")
</pallas_src>

<mosaic_0001>
module attributes {stable_mosaic.version = 11 : i64} {
  func.func @_pma_kernel(%arg0: i32, %arg1: memref<10x32xf32, #tpu.memory_space<vmem>>, %arg2: memref<32x64xf32, #tpu.memory_space<vmem>>, %arg3: memref<1x64xf32, #tpu.memory_space<vmem>>, %arg4: memref<32x32xf32, #tpu.memory_space<vmem>>, %arg5: memref<2x8x32xf32, #tpu.memory_space<vmem>>, %arg6: memref<2x32xf32, #tpu.memory_space<vmem>>, %arg7: memref<2x2x8xf32, #tpu.memory_space<vmem>>) attributes {dimension_semantics = [#tpu.dimension_semantics<parallel>], iteration_bounds = array<i64: 1>, scalar_prefetch = 0 : i64, scratch_operands = 0 : i64, tpu.core_type = #tpu.core_type<tc>, window_params = [{pipeline_mode = #tpu.pipeline_mode<synchronous>, transform_indices = @transform_0, window_bounds = array<i64: 10, 32>}, {pipeline_mode = #tpu.pipeline_mode<synchronous>, transform_indices = @transform_1, window_bounds = array<i64: 32, 64>}, {pipeline_mode = #tpu.pipeline_mode<synchronous>, transform_indices = @transform_2, window_bounds = array<i64: 1, 64>}, {pipeline_mode = #tpu.pipeline_mode<synchronous>, transform_indices = @transform_3, window_bounds = array<i64: 32, 32>}, {transform_indices = @transform_4, window_bounds = array<i64: 2, 8, 32>}, {transform_indices = @transform_5, window_bounds = array<i64: 2, 32>}, {transform_indices = @transform_6, window_bounds = array<i64: 2, 2, 8>}]} {
    %c0 = arith.constant 0 : index
    %c0_0 = arith.constant 0 : index
    %0 = vector.load %arg1[%c0, %c0_0] : memref<10x32xf32, #tpu.memory_space<vmem>>, vector<10x32xf32>
    %1 = vector.extract_strided_slice %0 {offsets = [0, 0], sizes = [1, 32], strides = [1, 1]} : vector<10x32xf32> to vector<1x32xf32>
    %2 = vector.extract_strided_slice %0 {offsets = [1, 0], sizes = [2, 32], strides = [1, 1]} : vector<10x32xf32> to vector<2x32xf32>
    %3 = vector.extract_strided_slice %0 {offsets = [3, 0], sizes = [2, 32], strides = [1, 1]} : vector<10x32xf32> to vector<2x32xf32>
    %4 = vector.extract_strided_slice %0 {offsets = [5, 0], sizes = [1, 32], strides = [1, 1]} : vector<10x32xf32> to vector<1x32xf32>
    %5 = vector.extract_strided_slice %0 {offsets = [6, 0], sizes = [1, 32], strides = [1, 1]} : vector<10x32xf32> to vector<1x32xf32>
    %6 = vector.extract_strided_slice %0 {offsets = [7, 0], sizes = [1, 32], strides = [1, 1]} : vector<10x32xf32> to vector<1x32xf32>
    %7 = vector.extract_strided_slice %0 {offsets = [8, 0], sizes = [1, 32], strides = [1, 1]} : vector<10x32xf32> to vector<1x32xf32>
    %8 = vector.extract_strided_slice %0 {offsets = [9, 0], sizes = [1, 32], strides = [1, 1]} : vector<10x32xf32> to vector<1x32xf32>
    %c0_1 = arith.constant 0 : index
    %c0_2 = arith.constant 0 : index
    %c0_3 = arith.constant 0 : index
    %9 = vector.load %arg5[%c0_1, %c0_2, %c0_3] : memref<2x8x32xf32, #tpu.memory_space<vmem>>, vector<2x8x32xf32>
    %10 = vector.shape_cast %9 : vector<2x8x32xf32> to vector<16x32xf32>
    %c0_4 = arith.constant 0 : index
    %c0_5 = arith.constant 0 : index
    %11 = vector.load %arg2[%c0_4, %c0_5] : memref<32x64xf32, #tpu.memory_space<vmem>>, vector<32x64xf32>
    %cst = arith.constant dense<0.000000e+00> : vector<16x64xf32>
    %12 = tpu.matmul %10, %11, %cst {dimension_numbers = #tpu.dot_dimension_numbers<[1], [0], [0], [1], [0, 0, 1, 1], [], []>} : vector<16x32xf32>, vector<32x64xf32>, vector<16x64xf32> -> vector<16x64xf32>
    %c0_6 = arith.constant 0 : index
    %c0_7 = arith.constant 0 : index
    %13 = vector.load %arg3[%c0_6, %c0_7] : memref<1x64xf32, #tpu.memory_space<vmem>>, vector<1x64xf32>
    %14 = vector.broadcast %13 : vector<1x64xf32> to vector<16x64xf32>
    %15 = arith.addf %12, %14 : vector<16x64xf32>
    %16 = vector.extract_strided_slice %15 {offsets = [0, 0], sizes = [16, 32], strides = [1, 1]} : vector<16x64xf32> to vector<16x32xf32>
    %17 = vector.shape_cast %16 : vector<16x32xf32> to vector<2x8x32xf32>
    %18 = vector.extract_strided_slice %15 {offsets = [0, 32], sizes = [16, 32], strides = [1, 1]} : vector<16x64xf32> to vector<16x32xf32>
    %19 = vector.shape_cast %18 : vector<16x32xf32> to vector<2x8x32xf32>
    %20 = vector.shape_cast %2 : vector<2x32xf32> to vector<1x2x32xf32>
    %21 = vector.shape_cast %20 : vector<1x2x32xf32> to vector<1x2x32xf32>
    %22 = vector.broadcast %21 : vector<1x2x32xf32> to vector<2x2x32xf32>
    "tpu.trace_start"() <{level = 10 : i32, message = "bhd,bnd->bhn"}> : () -> ()
    %cst_8 = arith.constant dense<0.000000e+00> : vector<2x2x8xf32>
    %23 = tpu.matmul %22, %17, %cst_8 {dimension_numbers = #tpu.dot_dimension_numbers<[2], [2], [1], [1], [0, 0, 0, 1, 1, 1], [0], [0]>} : vector<2x2x32xf32>, vector<2x8x32xf32>, vector<2x2x8xf32> -> vector<2x2x8xf32>
    "tpu.trace_stop"() : () -> ()
    %cst_9 = arith.constant dense<0xFF800000> : vector<2x2xf32>
    %24 = vector.multi_reduction <maximumf>, %23, %cst_9 [2] : vector<2x2x8xf32> to vector<2x2xf32>
    %25 = vector.shape_cast %24 : vector<2x2xf32> to vector<2x2x1xf32>
    %26 = vector.broadcast %25 : vector<2x2x1xf32> to vector<2x2x8xf32>
    %27 = arith.subf %23, %26 : vector<2x2x8xf32>
    %28 = math.exp %27 : vector<2x2x8xf32>
    %cst_10 = arith.constant dense<0.000000e+00> : vector<2x2xf32>
    %29 = vector.multi_reduction <add>, %28, %cst_10 [2] : vector<2x2x8xf32> to vector<2x2xf32>
    %30 = vector.shape_cast %29 : vector<2x2xf32> to vector<2x2x1xf32>
    %31 = vector.broadcast %30 : vector<2x2x1xf32> to vector<2x2x8xf32>
    %32 = arith.divf %28, %31 : vector<2x2x8xf32>
    "tpu.trace_start"() <{level = 10 : i32, message = "bhn,bnd->bhd"}> : () -> ()
    %cst_11 = arith.constant dense<0.000000e+00> : vector<2x2x32xf32>
    %33 = tpu.matmul %32, %19, %cst_11 {dimension_numbers = #tpu.dot_dimension_numbers<[2], [1], [1], [2], [0, 0, 0, 1, 1, 2], [0], [0]>} : vector<2x2x8xf32>, vector<2x8x32xf32>, vector<2x2x32xf32> -> vector<2x2x32xf32>
    "tpu.trace_stop"() : () -> ()
    %34 = vector.shape_cast %3 : vector<2x32xf32> to vector<1x2x32xf32>
    %35 = vector.broadcast %34 : vector<1x2x32xf32> to vector<2x2x32xf32>
    %36 = arith.mulf %33, %35 : vector<2x2x32xf32>
    %cst_12 = arith.constant dense<0.000000e+00> : vector<2x32xf32>
    %37 = vector.multi_reduction <add>, %36, %cst_12 [1] : vector<2x2x32xf32> to vector<2x32xf32>
    %38 = vector.broadcast %1 : vector<1x32xf32> to vector<2x32xf32>
    %39 = arith.addf %38, %37 : vector<2x32xf32>
    %cst_13 = arith.constant dense<0.000000e+00> : vector<2xf32>
    %40 = vector.multi_reduction <add>, %39, %cst_13 [1] : vector<2x32xf32> to vector<2xf32>
    %41 = vector.shape_cast %40 : vector<2xf32> to vector<2x1xf32>
    %cst_14 = arith.constant 3.200000e+01 : f32
    %42 = vector.broadcast %cst_14 : f32 to vector<2x1xf32>
    %43 = arith.divf %41, %42 : vector<2x1xf32>
    %44 = vector.broadcast %43 : vector<2x1xf32> to vector<2x32xf32>
    %45 = arith.subf %39, %44 : vector<2x32xf32>
    %46 = arith.mulf %45, %45 : vector<2x32xf32>
    %cst_15 = arith.constant dense<0.000000e+00> : vector<2xf32>
    %47 = vector.multi_reduction <add>, %46, %cst_15 [1] : vector<2x32xf32> to vector<2xf32>
    %48 = vector.shape_cast %47 : vector<2xf32> to vector<2x1xf32>
    %cst_16 = arith.constant 3.200000e+01 : f32
    %49 = vector.broadcast %cst_16 : f32 to vector<2x1xf32>
    %50 = arith.divf %48, %49 : vector<2x1xf32>
    %51 = vector.broadcast %43 : vector<2x1xf32> to vector<2x32xf32>
    %52 = arith.subf %39, %51 : vector<2x32xf32>
    %cst_17 = arith.constant 9.99999974E-6 : f32
    %53 = vector.broadcast %cst_17 : f32 to vector<2x1xf32>
    %54 = arith.addf %50, %53 : vector<2x1xf32>
    %55 = math.rsqrt %54 : vector<2x1xf32>
    %56 = vector.broadcast %55 : vector<2x1xf32> to vector<2x32xf32>
    %57 = arith.mulf %52, %56 : vector<2x32xf32>
    %58 = vector.broadcast %5 : vector<1x32xf32> to vector<2x32xf32>
    %59 = arith.mulf %57, %58 : vector<2x32xf32>
    %60 = vector.broadcast %6 : vector<1x32xf32> to vector<2x32xf32>
    %61 = arith.addf %59, %60 : vector<2x32xf32>
    %c0_18 = arith.constant 0 : index
    %c0_19 = arith.constant 0 : index
    %62 = vector.load %arg4[%c0_18, %c0_19] : memref<32x32xf32, #tpu.memory_space<vmem>>, vector<32x32xf32>
    %cst_20 = arith.constant dense<0.000000e+00> : vector<2x32xf32>
    %63 = tpu.matmul %61, %62, %cst_20 {dimension_numbers = #tpu.dot_dimension_numbers<[1], [0], [0], [1], [0, 0, 1, 1], [], []>} : vector<2x32xf32>, vector<32x32xf32>, vector<2x32xf32> -> vector<2x32xf32>
    %64 = vector.broadcast %4 : vector<1x32xf32> to vector<2x32xf32>
    %65 = arith.addf %63, %64 : vector<2x32xf32>
    %cst_21 = arith.constant 0.000000e+00 : f32
    %66 = vector.broadcast %cst_21 : f32 to vector<2x32xf32>
    %67 = arith.maximumf %65, %66 : vector<2x32xf32>
    %68 = arith.addf %61, %67 : vector<2x32xf32>
    %cst_22 = arith.constant dense<0.000000e+00> : vector<2xf32>
    %69 = vector.multi_reduction <add>, %68, %cst_22 [1] : vector<2x32xf32> to vector<2xf32>
    %70 = vector.shape_cast %69 : vector<2xf32> to vector<2x1xf32>
    %cst_23 = arith.constant 3.200000e+01 : f32
    %71 = vector.broadcast %cst_23 : f32 to vector<2x1xf32>
    %72 = arith.divf %70, %71 : vector<2x1xf32>
    %73 = vector.broadcast %72 : vector<2x1xf32> to vector<2x32xf32>
    %74 = arith.subf %68, %73 : vector<2x32xf32>
    %75 = arith.mulf %74, %74 : vector<2x32xf32>
    %cst_24 = arith.constant dense<0.000000e+00> : vector<2xf32>
    %76 = vector.multi_reduction <add>, %75, %cst_24 [1] : vector<2x32xf32> to vector<2xf32>
    %77 = vector.shape_cast %76 : vector<2xf32> to vector<2x1xf32>
    %cst_25 = arith.constant 3.200000e+01 : f32
    %78 = vector.broadcast %cst_25 : f32 to vector<2x1xf32>
    %79 = arith.divf %77, %78 : vector<2x1xf32>
    %80 = vector.broadcast %72 : vector<2x1xf32> to vector<2x32xf32>
    %81 = arith.subf %68, %80 : vector<2x32xf32>
    %cst_26 = arith.constant 9.99999974E-6 : f32
    %82 = vector.broadcast %cst_26 : f32 to vector<2x1xf32>
    %83 = arith.addf %79, %82 : vector<2x1xf32>
    %84 = math.rsqrt %83 : vector<2x1xf32>
    %85 = vector.broadcast %84 : vector<2x1xf32> to vector<2x32xf32>
    %86 = arith.mulf %81, %85 : vector<2x32xf32>
    %87 = vector.broadcast %7 : vector<1x32xf32> to vector<2x32xf32>
    %88 = arith.mulf %86, %87 : vector<2x32xf32>
    %89 = vector.broadcast %8 : vector<1x32xf32> to vector<2x32xf32>
    %90 = arith.addf %88, %89 : vector<2x32xf32>
    %91 = arith.cmpf one, %90, %90 : vector<2x32xf32>
    %cst_27 = arith.constant 0.000000e+00 : f32
    %92 = vector.broadcast %cst_27 : f32 to vector<2x32xf32>
    %93 = arith.select %91, %92, %90 : vector<2x32xi1>, vector<2x32xf32>
    %cst_28 = arith.constant 0x7F800000 : f32
    %94 = vector.broadcast %cst_28 : f32 to vector<2x32xf32>
    %95 = arith.cmpf oeq, %93, %94 : vector<2x32xf32>
    %cst_29 = arith.constant 3.40282347E+38 : f32
    %96 = vector.broadcast %cst_29 : f32 to vector<2x32xf32>
    %97 = arith.select %95, %96, %93 : vector<2x32xi1>, vector<2x32xf32>
    %cst_30 = arith.constant 0xFF800000 : f32
    %98 = vector.broadcast %cst_30 : f32 to vector<2x32xf32>
    %99 = arith.cmpf oeq, %97, %98 : vector<2x32xf32>
    %cst_31 = arith.constant -3.40282347E+38 : f32
    %100 = vector.broadcast %cst_31 : f32 to vector<2x32xf32>
    %101 = arith.select %99, %100, %97 : vector<2x32xi1>, vector<2x32xf32>
    %c0_32 = arith.constant 0 : index
    %c0_33 = arith.constant 0 : index
    %102 = vector.load %arg6[%c0_32, %c0_33] : memref<2x32xf32, #tpu.memory_space<vmem>>, vector<2x32xf32>
    tpu.vector_store %arg6[%c0_32, %c0_33], %101 {strides = array<i32>} : memref<2x32xf32, #tpu.memory_space<vmem>>, vector<2x32xf32>,
    %c0_34 = arith.constant 0 : index
    %c0_35 = arith.constant 0 : index
    %c0_36 = arith.constant 0 : index
    %103 = vector.load %arg7[%c0_34, %c0_35, %c0_36] : memref<2x2x8xf32, #tpu.memory_space<vmem>>, vector<2x2x8xf32>
    tpu.vector_store %arg7[%c0_34, %c0_35, %c0_36], %32 {strides = array<i32>} : memref<2x2x8xf32, #tpu.memory_space<vmem>>, vector<2x2x8xf32>,
    return
  }
  func.func @transform_0(%arg0: i32) -> (i32, i32) {
    %c0_i32 = arith.constant 0 : i32
    %c0_i32_0 = arith.constant 0 : i32
    %c0_i32_1 = arith.constant 0 : i32
    return %c0_i32, %c0_i32_0 : i32, i32
  }
  func.func @transform_1(%arg0: i32) -> (i32, i32) {
    %c0_i32 = arith.constant 0 : i32
    %c0_i32_0 = arith.constant 0 : i32
    %c0_i32_1 = arith.constant 0 : i32
    return %c0_i32, %c0_i32_0 : i32, i32
  }
  func.func @transform_2(%arg0: i32) -> (i32, i32) {
    %c0_i32 = arith.constant 0 : i32
    %c0_i32_0 = arith.constant 0 : i32
    %c0_i32_1 = arith.constant 0 : i32
    return %c0_i32, %c0_i32_0 : i32, i32
  }
  func.func @transform_3(%arg0: i32) -> (i32, i32) {
    %c0_i32 = arith.constant 0 : i32
    %c0_i32_0 = arith.constant 0 : i32
    %c0_i32_1 = arith.constant 0 : i32
    return %c0_i32, %c0_i32_0 : i32, i32
  }
  func.func @transform_4(%arg0: i32) -> (i32, i32, i32) {
    %c0_i32 = arith.constant 0 : i32
    %c0_i32_0 = arith.constant 0 : i32
    %c0_i32_1 = arith.constant 0 : i32
    return %arg0, %c0_i32, %c0_i32_0 : i32, i32, i32
  }
  func.func @transform_5(%arg0: i32) -> (i32, i32) {
    %c0_i32 = arith.constant 0 : i32
    %c0_i32_0 = arith.constant 0 : i32
    return %arg0, %c0_i32 : i32, i32
  }
  func.func @transform_6(%arg0: i32) -> (i32, i32, i32) {
    %c0_i32 = arith.constant 0 : i32
    %c0_i32_0 = arith.constant 0 : i32
    %c0_i32_1 = arith.constant 0 : i32
    return %arg0, %c0_i32, %c0_i32_0 : i32, i32, i32
  }
}

</mosaic_0001>

<bundles_post_ra>
// kernel: pma_forward.1
= control target key start
LH: loop header
LB: loop body
LE: loop exit
PB: predicated region body
PF: predicated region fallthrough
CT: control target
= control target key end

     0   :  { %vm38_vm0 = vcmask 261120   ;;  %s885_s0 = inlined_call_operand.vmem [shape: f32[10,32], index: 0, kind: input, shape index: {}]   ;;  %s886_s1 = inlined_call_operand.vmem [shape: f32[32,64], index: 1, kind: input, shape index: {}]   ;;  %s887_s2 = inlined_call_operand.vmem [shape: f32[1,64], index: 2, kind: input, shape index: {}]   ;;  %s888_s3 = inlined_call_operand.vmem [shape: f32[32,32], index: 3, kind: input, shape index: {}]   ;;  %s889_s4 = inlined_call_operand.vmem [shape: f32[2,8,32], index: 4, kind: input, shape index: {}]   ;;  %s890_s5 = inlined_call_operand.hbm [shape: f32[2,32], index: 5, kind: output, shape index: {0}]   ;;  %s891_s6 = inlined_call_operand.vmem [shape: f32[2,2,8], index: 6, kind: output, shape index: {1}]  }
   0x1   :  { %v30_v0 = vld [vmem:[%s886_s1 + $0x18] sm:$0xff]  ;;  %v29_v1 = vld [vmem:[%s886_s1 + $0x10] sm:$0xff]  ;;  %v25_v2 = vld [vmem:[%s889_s4] sm:$0xff] }
   0x2   :  { %661 = vmatprep.subr.mxu0 %v30_v0  ;;  %v28_v3 = vld [vmem:[%s886_s1 + $0x8] sm:$0xff]  ;;  %669 = vmatprep.mubr.msk.f32.mxu0 %vm38_vm0, %v25_v2 }
   0x3   :  { %662 = vmatpush3.msra.mxu0 %v30_v0 }
   0x4   :  { %12 = vsyncpa [#allocation3], 0  ;;  %663 = vmatprep.subr.mxu0 %v29_v1  ;;  %v27_v4 = vld [vmem:[%s886_s1] sm:$0xff]  ;;  %v26_v5 = vld [vmem:[%s889_s4 + $0x8] sm:$0xff]  ;;  %v741_v6 = vmov 0.0   ;;  %vm742_vm1 = vmmov 0   ;;  %v465_v46 = vlaneseq }
   0x5   :  { %664 = vmatpush3.msra.mxu0 %v29_v1  ;;  %672 = vmatprep.subr.mxu1 %v741_v6  ;;  %v809_v8 = vld [vmem:[%s885_s0] sm:$0xff]  ;;  %vm270_vm2 = vcmask 58368   ;;  %vm296_vm3 = vcmask 64512   ;;  %vm450_vm4 = vcmask 254976   ;;  %vm471_vm5 = vcmask 1041409   ;;  %s744_s23 = smov [#allocation2]  }
   0x6   :  { %665 = vmatprep.subr.mxu0 %v28_v3  ;;  %674 = vmatprep.mubr.msk.f32.mxu1 %vm742_vm1, %v741_v6  ;;  %v632_v9 = vld [vmem:[%s887_s2] ss:$0 sm:$0xff]  ;;  %v121_v12 = vrot.slane %v809_v8, 1  ;;  %s743_s2 = smov 96   ;;  %v446_v38 = vrot.slane %v809_v8, 3  ;;  %v843_v52 = vshrl.u32 %v465_v46, 7 }
   0x7   :  { %666 = vmatpush3.msra.mxu0 %v28_v3  ;;  %s620_s24 = sshll.u32 %s744_s23, 4  ;;  %s621_s24 = int_to_ptr.vmem [resolvable:$true] %s620_s24 }
   0x8   :  { %667 = vmatprep.subr.mxu0 %v27_v4  ;;  %v467_v56 = vsub.s32 0, %v843_v52  ;;  %p724_p1 = scmp.lt.s32.totalorder %s621_s24, %s621_s24 }
   0x9   :  { %668 = vmatpush3.msra.mxu0 %v27_v4 }
   0xa   :  { %670 = vmatmul.mubr.msk.f32.vlgmr.msra.gmra.mxu0 %vm38_vm0, %v26_v5  ;;  %692 = vmatprep.subr.mxu0 %v741_v6  ;;  %v468_v60 = vrot.slane %v809_v8, %v467_v56 }
   0xb   :  { %700 = vmatprep.mubr.msk.f32.mxu0 %vm742_vm1, %v741_v6 }
  0xca   :  { %v671_v7 = vpop.f32.mrf.mxu0 }
  0xcb   :  { %v117_v13 = vadd.f32 %v671_v7, %v632_v9 }
  0xcc   :  { %v111_v10 = vpop.f32.mrf.mxu0 }
  0xcd   :  { %v112_v11 = vadd.f32 %v632_v9, %v111_v10  ;;  %v502_v9 = vld [vmem:[%s888_s3 + $0x18] sm:$0xff]  ;;  %v501_v10 = vld [vmem:[%s888_s3 + $0x10] sm:$0xff] }
  0xce   :  { %693 = vmatpush3.msra.mxu0 %v502_v9 }
  0xcf   :  { %673 = vmatpush3.xpose.msk.msra.mxu1 %vm38_vm0, %v112_v11  ;;  %694 = vmatprep.subr.mxu0 %v741_v6 }
  0xd0   :  { %677 = vmatprep.subr.mxu1 %v741_v6  ;;  %695 = vmatpush3.msra.mxu0 %v501_v10 }
  0xd1   :  { %696 = vmatprep.subr.mxu0 %v741_v6 }
  0xd2   :  { %675 = vmatmul.mubr.msk.f32.vlgmr.msra.gmra.mxu1 %vm38_vm0, %v121_v12 }
  0xd3   :  { %678 = vmatpush3.xpose.msk.msra.mxu1 %vm38_vm0, %v117_v13  ;;  %679 = vmatprep.mubr.msk.f32.mxu1 %vm742_vm1, %v741_v6 }
  0xd4   :  { %682 = vmatprep.subr.mxu1 %v741_v6 }
  0xd6   :  { %680 = vmatmul.mubr.msk.f32.vlgmr.msra.gmra.mxu1 %vm38_vm0, %v121_v12  ;;  %v499_v12 = vld [vmem:[%s888_s3] sm:$0xff] }
  0xd7   :  { %684 = vmatprep.mubr.msk.f32.mxu1 %vm742_vm1, %v741_v6 }
 0x192   :  { %v193_v14 = vpop.f32.mrf.mxu1 }
 0x193   :  { %v271_v15 = vsel %vm270_vm2, %v193_v14, -inf }
 0x194   :  { %272 = vmax.xlane.f32.xlu0 %v271_v15  ;;  %v676_v16 = vpop.f32.mrf.mxu1 }
 0x195   :  { %v491_v16 = vsub.s32 6, %v843_v52 }
 0x196   :  { %v266_v17 = vpop.f32.mrf.mxu1 }
 0x197   :  { %v274_v18 = vsel %vm270_vm2, %v266_v17, -inf }
 0x198   :  { %275 = vmax.xlane.f32.xlu0 %v274_v18  ;;  %v681_v19 = vpop.f32.mrf.mxu1  ;;  %v492_v18 = vrot.slane %v809_v8, %v491_v16 }
 0x1ae   :  { %293 = vrot.lane.b32.xlu0 %v112_v11, %s743_s2  ;;  %v500_v11 = vld [vmem:[%s888_s3 + $0x8] sm:$0xff] }
 0x1af   :  { %697 = vmatpush3.msra.mxu0 %v500_v11 }
 0x1b0   :  { %698 = vmatprep.subr.mxu0 %v741_v6 }
 0x1b1   :  { %699 = vmatpush3.msra.mxu0 %v499_v12 }
 0x21d   :  { %v273_v20 = vpop.xlane.xlu0 %272 }
 0x21e   :  { %v277_v21 = vsub.f32 %v193_v14, %v273_v20 }
 0x220   :  { %v279_v22 = vmul.f32 1.442695, %v277_v21 }
 0x221   :  { %v276_v23 = vpop.xlane.xlu0 %275 }
 0x222   :  { %707 = vpow2.f32 %v279_v22  ;;  %v278_v24 = vsub.f32 %v266_v17, %v276_v23  ;;  %v496_v17 = vsub.s32 7, %v843_v52 }
 0x224   :  { %v281_v25 = vmul.f32 1.442695, %v278_v24  ;;  %v497_v21 = vrot.slane %v809_v8, %v496_v17 }
 0x225   :  { %v294_v26 = vpop.permute.xlu0 %293 }
 0x226   :  { %709 = vpow2.f32 %v281_v25  ;;  %683 = vmatpush3.msra.mxu1 %v294_v26 }
 0x227   :  { %687 = vmatprep.subr.mxu1 %v741_v6 }
 0x22f   :  { %v708_v27 = vpop.eup %707 }
 0x230   :  { %v283_v28 = vsel %vm270_vm2, %v708_v27, 0.0 }
 0x231   :  { %284 = vadd.xlane.f32.xlu1 %v283_v28 }
 0x233   :  { %v710_v29 = vpop.eup %709 }
 0x234   :  { %v286_v30 = vsel %vm270_vm2, %v710_v29, 0.0 }
 0x235   :  { %287 = vadd.xlane.f32.xlu1 %v286_v30 }
 0x246   :  { %370 = vrot.lane.b32.xlu1 %v117_v13, %s743_s2 }
 0x2ba   :  { %v285_v31 = vpop.xlane.xlu1 %284 }
 0x2bb   :  { %711 = vrcp.f32 %v285_v31 }
 0x2be   :  { %v288_v32 = vpop.xlane.xlu1 %287 }
 0x2bf   :  { %713 = vrcp.f32 %v288_v32 }
 0x2c2   :  { %v371_v35 = vpop.permute.xlu1 %370 }
 0x2c8   :  { %v712_v33 = vpop.eup %711 }
 0x2c9   :  { %v290_v34 = vmul.f32 %v712_v33, %v708_v27 }
 0x2cb   :  { %685 = vmatmul.mubr.msk.f32.vlgmr.msra.gmra.mxu1 %vm296_vm3, %v290_v34  ;;  %612 = vst.msk [vmem:[%s891_s6] sm:$0x3] %vm270_vm2, %v290_v34 }
 0x2cc   :  { %v714_v36 = vpop.eup %713  ;;  %688 = vmatpush3.msra.mxu1 %v371_v35  ;;  %689 = vmatprep.mubr.msk.f32.mxu1 %vm742_vm1, %v741_v6  ;;  %v505_v6 = vsub.s32 5, %v843_v52 }
 0x2cd   :  { %v292_v37 = vmul.f32 %v714_v36, %v710_v29 }
 0x2ce   :  { %v506_v24 = vrot.slane %v809_v8, %v505_v6  ;;  %v24_v8 = vld [vmem:[%s885_s0 + $0x8] sm:$0x3]  ;;  %s719_s0 = scalar_lea.vmem %s621_s24, 32 }
 0x2cf   :  { %690 = vmatmul.mubr.msk.f32.vlgmr.msra.gmra.mxu1 %vm296_vm3, %v292_v37  ;;  %613 = vst.msk [vmem:[%s891_s6 + $0x2] sm:$0x3] %vm270_vm2, %v292_v37  ;;  %p720_p0 = scmp.ne.s32.totalorder %s621_s24, %s719_s0  ;;  %p725_p2 = scmp.lt.s32.totalorder %s719_s0, %s719_s0 }
 0x2d1   :  { %p726_p3 = por %p725_p2, %p724_p1 }
 0x2d3   :  { %p727_p4 = pnand %p726_p3, %p720_p0 }
 0x38b   :  { %v366_v39 = vpop.f32.mrf.mxu1 }
 0x38c   :  { %v448_v40 = vmul.f32 %v446_v38, %v366_v39  ;;  %v602_v39 = vsub.s32 1, %v843_v52 }
 0x38d   :  { %v686_v41 = vpop.f32.mrf.mxu1 }
 0x38e   :  { %v451_v42 = vsel %vm450_vm4, %v448_v40, 0.0  ;;  %v598_v40 = vrot.slane %v24_v8, %v467_v56 }
 0x38f   :  { %v452_v43 = vrot.slane %v451_v42, 4  ;;  %v442_v44 = vpop.f32.mrf.mxu1 }
 0x390   :  { %v449_v45 = vmul.f32 %v446_v38, %v442_v44 }
 0x391   :  { %v453_v47 = vadd.f32 %v452_v43, %v451_v42  ;;  %v691_v48 = vpop.f32.mrf.mxu1  ;;  %v603_v43 = vrot.slane %v24_v8, %v602_v39 }
 0x392   :  { %v458_v49 = vsel %vm450_vm4, %v449_v45, 0.0 }
 0x393   :  { %v454_v50 = vrot.slane %v453_v47, 2  ;;  %v459_v51 = vrot.slane %v458_v49, 4 }
 0x395   :  { %v455_v53 = vadd.f32 %v454_v50, %v453_v47  ;;  %v460_v54 = vadd.f32 %v459_v51, %v458_v49 }
 0x397   :  { %v461_v55 = vrot.slane %v460_v54, 2  ;;  %v456_v57 = vrot.slane %v455_v53, 1 }
 0x399   :  { %v462_v58 = vadd.f32 %v461_v55, %v460_v54  ;;  %v457_v61 = vadd.f32 %v456_v57, %v455_v53 }
 0x39b   :  { %v463_v59 = vrot.slane %v462_v58, 1 }
 0x39d   :  { %v464_v62 = vadd.f32 %v463_v59, %v462_v58 }
 0x39f   :  { %v472_v63 = vsel %vm471_vm5, %v464_v62, %v457_v61 }
 0x3a0   :  { %v474_v0 = vadd.f32 %v472_v63, %v468_v60 }
 0x3a2   :  { %v475_v1 = vsel %vm450_vm4, %v474_v0, 0.0 }
 0x3a3   :  { %476 = vadd.xlane.f32.xlu1 %v475_v1 }
 0x42c   :  { %v477_v2 = vpop.xlane.xlu1 %476 }
 0x42d   :  { %v479_v3 = vmul.f32 0.03125, %v477_v2 }
 0x42f   :  { %v480_v4 = vsub.f32 %v474_v0, %v479_v3 }
 0x431   :  { %v481_v5 = vmul.f32 %v480_v4, %v480_v4 }
 0x433   :  { %v482_v7 = vsel %vm450_vm4, %v481_v5, 0.0 }
 0x434   :  { %483 = vadd.xlane.f32.xlu0 %v482_v7 }
 0x4bd   :  { %v484_v13 = vpop.xlane.xlu0 %483 }
 0x4be   :  { %v485_v14 = vmul.f32 0.03125, %v484_v13 }
 0x4c0   :  { %v486_v15 = vadd.f32 1e-05, %v485_v14 }
 0x4c2   :  { %715 = vrsqrt.f32 %v486_v15 }
 0x4cf   :  { %v716_v19 = vpop.eup %715 }
 0x4d0   :  { %v488_v20 = vmul.f32 %v716_v19, %v480_v4 }
 0x4d2   :  { %v493_v22 = vmul.f32 %v492_v18, %v488_v20 }
 0x4d4   :  { %v498_v23 = vadd.f32 %v497_v21, %v493_v22 }
 0x4d6   :  { %701 = vmatmul.mubr.msk.f32.vlgmr.msra.gmra.mxu0 %vm38_vm0, %v498_v23 }
 0x596   :  { %v576_v25 = vpop.f32.mrf.mxu0 }
 0x597   :  { %v577_v26 = vadd.f32 %v576_v25, %v506_v24 }
 0x598   :  { %v702_v27 = vpop.f32.mrf.mxu0 }
 0x599   :  { %v580_v28 = vmax.f32 %v577_v26, 0.0 }
 0x59b   :  { %v581_v29 = vadd.f32 %v580_v28, %v498_v23 }
 0x59d   :  { %v582_v30 = vsel %vm450_vm4, %v581_v29, 0.0 }
 0x59e   :  { %583 = vadd.xlane.f32.xlu0 %v582_v30 }
 0x627   :  { %v584_v31 = vpop.xlane.xlu0 %583 }
 0x628   :  { %v585_v32 = vmul.f32 0.03125, %v584_v31 }
 0x62a   :  { %v586_v33 = vsub.f32 %v581_v29, %v585_v32 }
 0x62c   :  { %v587_v34 = vmul.f32 %v586_v33, %v586_v33 }
 0x62e   :  { %v588_v35 = vsel %vm450_vm4, %v587_v34, 0.0 }
 0x62f   :  { %589 = vadd.xlane.f32.xlu1 %v588_v35 }
 0x6b8   :  { %v590_v36 = vpop.xlane.xlu1 %589 }
 0x6b9   :  { %v591_v37 = vmul.f32 0.03125, %v590_v36 }
 0x6bb   :  { %v592_v38 = vadd.f32 1e-05, %v591_v37 }
 0x6bd   :  { %717 = vrsqrt.f32 %v592_v38 }
 0x6ca   :  { %v718_v41 = vpop.eup %717 }
 0x6cb   :  { %v594_v42 = vmul.f32 %v718_v41, %v586_v33 }
 0x6cd   :  { %v599_v44 = vmul.f32 %v598_v40, %v594_v42 }
 0x6cf   :  { %v604_v45 = vadd.f32 %v603_v43, %v599_v44 }
 0x6d1   :  { %vm605_vm6 = vcmp.ne.f32.partialorder %v604_v45, %v604_v45 }
 0x6d2   :  { %v606_v46 = vsel %vm605_vm6, 0.0, %v604_v45 }
 0x6d3   :  { %vm607_vm7 = vcmp.eq.f32.partialorder %v606_v46, inf }
 0x6d4   :  { %v608_v47 = vsel %vm607_vm7, 3.4028235e+38, %v606_v46 }
 0x6d5   :  { %vm609_vm8 = vcmp.eq.f32.partialorder %v608_v47, -inf }
 0x6d6   :  { %v610_v48 = vsel %vm609_vm8, -3.4028235e+38, %v608_v47 }
 0x6d7   :  { %611 = vst.msk [vmem:[#allocation2] sm:$0x3] %vm450_vm4, %v610_v48 }
 0x6d8   :  { %730 = shalt.err (!%p727_p4)
}
 0x6d9   :  { %623 = dma.vmem_to_hbm [thread:$0]  %s621_s24, 32, %s890_s5, [#allocation3]  }
 0x6da   :  { %739 = dma.done.wait [#allocation3], 32  }
 0x6db   :  { %740 = vsyncadd [#allocation3], 4294967264 }
 0x6dc   :  { %631 = vsyncpa [#allocation3], 1 }

</bundles_post_ra>
